<compile_context>
chip_gen: v7x
topology: tpu7x:2x2x1
jax: 0.10.0
libtpu: 0.0.40
codegen_flags: <defaults>
</compile_context>

<pallas_src>
import jax
import jax.numpy as jnp
from jax.experimental import pallas as pl
from jax.experimental.pallas import tpu as pltpu


def _round_up(x, m):
    return (x + m - 1) // m * m


def _mlp_kernel(x_ref, w1_ref, b1_ref, w2_ref, b2_ref, w3_ref, b3_ref, o_ref):
    # In-kernel f32 -> bf16 cast of the activations (saves a whole XLA HBM pass).
    x = x_ref[...].astype(jnp.bfloat16)
    # Layer 1: Linear + ReLU (bf16 MXU matmul, f32 accumulation, f32 epilogue)
    h1 = jnp.dot(x, w1_ref[...], preferred_element_type=jnp.float32)
    h1 = jnp.maximum(h1 + b1_ref[...], 0.0)
    # Layer 2: Linear + ReLU
    h2 = jnp.dot(h1.astype(jnp.bfloat16), w2_ref[...],
                 preferred_element_type=jnp.float32)
    h2 = jnp.maximum(h2 + b2_ref[...], 0.0)
    # Layer 3: Linear (logits, no activation) -- output lane-padded to 128,
    # stored in bf16 to halve writeback DMA.
    logits = jnp.dot(h2.astype(jnp.bfloat16), w3_ref[...],
                     preferred_element_type=jnp.float32)
    o_ref[...] = (logits + b3_ref[...]).astype(o_ref.dtype)


def prepare_params(params, *, lane=128):
    """One-time parameter prep (call at model-load time, NOT per forward).

    - Transposes PyTorch (out, in) weights to (in, out) once.
    - Zero-pads w1's input (K) dimension to a multiple of 128 lanes
      (e.g. 784 -> 896 for 28x28 Fashion-MNIST).
    - Zero-pads the final layer's output dim to a multiple of 128 lanes.
    - Casts weights to bf16; biases kept as (1, out) f32.
    """
    w1 = jnp.asarray(params["w1"]).T.astype(jnp.float32)   # (in, hidden)
    w2 = jnp.asarray(params["w2"]).T.astype(jnp.float32)   # (hidden, hidden)
    w3 = jnp.asarray(params["w3"]).T.astype(jnp.float32)   # (hidden, num_classes)
    b1 = jnp.asarray(params["b1"]).reshape(1, -1).astype(jnp.float32)
    b2 = jnp.asarray(params["b2"]).reshape(1, -1).astype(jnp.float32)
    b3 = jnp.asarray(params["b3"]).reshape(1, -1).astype(jnp.float32)

    in_features = w1.shape[0]
    in_pad = max(lane, _round_up(in_features, lane))
    if in_pad != in_features:
        w1 = jnp.pad(w1, ((0, in_pad - in_features), (0, 0)))

    num_classes = w3.shape[1]
    nc_pad = max(lane, _round_up(num_classes, lane))
    if nc_pad != num_classes:
        w3 = jnp.pad(w3, ((0, 0), (0, nc_pad - num_classes)))
        b3 = jnp.pad(b3, ((0, 0), (0, nc_pad - num_classes)))

    return {
        "w1": w1.astype(jnp.bfloat16), "b1": b1,
        "w2": w2.astype(jnp.bfloat16), "b2": b2,
        "w3": w3.astype(jnp.bfloat16), "b3": b3,
        "in_features": in_features,
        "num_classes": num_classes,
    }


def simplenet_forward(x_nchw, prep, *, block_batch=2048):
    """SimpleNet forward.

    x_nchw: (N, C, H, W) float32
    prep:   output of prepare_params (bf16 (in,out) weights, padded K / logits)
    block_batch: max batch tile (rows per grid step).  2048 amortizes the
                 ~0.35 us per-step pipeline overhead; working set
                 (single-buffered weights + double-buffered f32 x / bf16 out
                 tiles + f32 intermediates) stays under the 48 MiB VMEM budget
                 set below on all of v5e/v6e/v7x.
    """
    n = x_nchw.shape[0]
    x_flat = x_nchw.reshape(n, -1)                 # nn.Flatten; stays float32
    in_f = x_flat.shape[1]
    assert in_f == prep["in_features"], "input does not match prepared params"

    in_pad = prep["w1"].shape[0]
    if in_pad != in_f:
        # Lane-align K for layer 1 (e.g. 784 -> 896); zero cols match w1's padded rows.
        x_flat = jnp.pad(x_flat, ((0, 0), (0, in_pad - in_f)))

    hidden = prep["w1"].shape[1]
    out_pad = prep["w3"].shape[1]
    num_classes = prep["num_classes"]

    # Batch tile: multiple of 16 (bf16 sublane packing); capped so large
    # batches always yield >= 2 grid steps (v7x megacore gets both TCs busy).
    tb = max(16, min(_round_up(block_batch, 16),
                     _round_up(pl.cdiv(n, 2), 16)))
    # Pad the batch only when it is not tile-aligned.  For serving, pick batch
    # sizes that are multiples of tb so this pad pass never runs.
    n_pad = _round_up(n, tb)
    if n_pad != n:
        x_flat = jnp.pad(x_flat, ((0, n_pad - n), (0, 0)))

    grid = (n_pad // tb,)

    flops = 2 * n_pad * (in_pad * hidden + hidden * hidden + hidden * out_pad)
    bytes_accessed = (
        n_pad * in_pad * 4                                    # f32 activations in
        + sum(prep[k].size * prep[k].dtype.itemsize
              for k in ("w1", "w2", "w3", "b1", "b2", "b3"))  # weights/biases
        + n_pad * out_pad * 2)                                # bf16 logits out

    # Grid-invariant operands: constant index_map, single pipeline buffer.
    def const_spec(shape):
        return pl.BlockSpec(shape, lambda i: (0, 0),
                            pipeline_mode=pl.Buffered(1))

    out_full = pl.pallas_call(
        _mlp_kernel,
        out_shape=jax.ShapeDtypeStruct((n_pad, out_pad), jnp.bfloat16),
        grid_spec=pltpu.PrefetchScalarGridSpec(
            num_scalar_prefetch=0,
            grid=grid,
            in_specs=[
                # activations: f32, tiled along the batch grid axis
                pl.BlockSpec((tb, in_pad), lambda i: (i, 0)),
                # weights / biases: VMEM-resident across the whole grid
                const_spec((in_pad, hidden)),
                const_spec((1, hidden)),
                const_spec((hidden, hidden)),
                const_spec((1, hidden)),
                const_spec((hidden, out_pad)),
                const_spec((1, out_pad)),
            ],
            out_specs=pl.BlockSpec((tb, out_pad), lambda i: (i, 0)),
        ),
        compiler_params=pltpu.CompilerParams(
            dimension_semantics=("parallel",),
            vmem_limit_bytes=48 * 1024 * 1024),
        cost_estimate=pl.CostEstimate(
            flops=flops, transcendentals=0, bytes_accessed=bytes_accessed),
    )(x_flat, prep["w1"], prep["b1"], prep["w2"], prep["b2"],
      prep["w3"], prep["b3"])

    # Drop batch padding and logits lane padding; return f32 like the PyTorch model.
    return out_full[:n, :num_classes].astype(jnp.float32)


def init_params(key, in_features, hidden, num_classes):
    """Deterministic synthetic init matching nn.Linear parameter shapes."""
    ks = jax.random.split(key, 6)

    def linear_init(kw, kb, fan_in, fan_out):
        bound = 1.0 / jnp.sqrt(fan_in)
        w = jax.random.uniform(kw, (fan_out, fan_in), jnp.float32, -bound, bound)
        b = jax.random.uniform(kb, (fan_out,), jnp.float32, -bound, bound)
        return w, b

    w1, b1 = linear_init(ks[0], ks[1], in_features, hidden)
    w2, b2 = linear_init(ks[2], ks[3], hidden, hidden)
    w3, b3 = linear_init(ks[4], ks[5], hidden, num_classes)
    return {"w1": w1, "b1": b1, "w2": w2, "b2": b2, "w3": w3, "b3": b3}


if __name__ == "__main__":
    # Small shapes consistent with the module: image 16x16, 1 channel,
    # 10 classes (Fashion-MNIST style), batch = 2.
    batch, channels, height, width = 2, 1, 16, 16
    hidden, num_classes = 512, 10
    in_features = channels * height * width

    key = jax.random.PRNGKey(0)
    kx, kp = jax.random.split(key)
    x = jax.random.normal(kx, (batch, channels, height, width), jnp.float32)
    params = init_params(kp, in_features, hidden, num_classes)

    prep = prepare_params(params)            # one-time, at "load" time
    out = simplenet_forward(x, prep)
    jax.block_until_ready(out)

    # Reference of the same math path (bf16 matmul inputs, f32 accumulation).
    xf = x.reshape(batch, -1).astype(jnp.bfloat16)
    w1b = params["w1"].T.astype(jnp.bfloat16)
    w2b = params["w2"].T.astype(jnp.bfloat16)
    w3b = params["w3"].T.astype(jnp.bfloat16)
    h1 = jnp.maximum(
        jnp.dot(xf, w1b, preferred_element_type=jnp.float32) + params["b1"], 0.0)
    h2 = jnp.maximum(
        jnp.dot(h1.astype(jnp.bfloat16), w2b,
                preferred_element_type=jnp.float32) + params["b2"], 0.0)
    ref = jnp.dot(h2.astype(jnp.bfloat16), w3b,
                  preferred_element_type=jnp.float32) + params["b3"]

    assert out.shape == (batch, num_classes)
    assert out.dtype == jnp.float32
    # Kernel output went through a bf16 store, so allow bf16-level rounding.
    assert jnp.allclose(out, ref, atol=2e-2, rtol=2e-2), (
        f"max abs err {float(jnp.max(jnp.abs(out - ref)))}")

    print("KERNEL_OK")
</pallas_src>

<mosaic_0001>
module attributes {stable_mosaic.version = 11 : i64} {
  func.func @_mlp_kernel(%arg0: i32, %arg1: memref<16x256xf32, #tpu.memory_space<vmem>>, %arg2: memref<256x512xbf16, #tpu.memory_space<vmem>>, %arg3: memref<1x512xf32, #tpu.memory_space<vmem>>, %arg4: memref<512x512xbf16, #tpu.memory_space<vmem>>, %arg5: memref<1x512xf32, #tpu.memory_space<vmem>>, %arg6: memref<512x128xbf16, #tpu.memory_space<vmem>>, %arg7: memref<1x128xf32, #tpu.memory_space<vmem>>, %arg8: memref<16x128xbf16, #tpu.memory_space<vmem>>) attributes {dimension_semantics = [#tpu.dimension_semantics<parallel>], iteration_bounds = array<i64: 1>, scalar_prefetch = 0 : i64, scratch_operands = 0 : i64, tpu.core_type = #tpu.core_type<tc>, window_params = [{transform_indices = @transform_0, window_bounds = array<i64: 16, 256>}, {pipeline_mode = #tpu.pipeline_mode<synchronous>, transform_indices = @transform_1, window_bounds = array<i64: 256, 512>}, {pipeline_mode = #tpu.pipeline_mode<synchronous>, transform_indices = @transform_2, window_bounds = array<i64: 1, 512>}, {pipeline_mode = #tpu.pipeline_mode<synchronous>, transform_indices = @transform_3, window_bounds = array<i64: 512, 512>}, {pipeline_mode = #tpu.pipeline_mode<synchronous>, transform_indices = @transform_4, window_bounds = array<i64: 1, 512>}, {pipeline_mode = #tpu.pipeline_mode<synchronous>, transform_indices = @transform_5, window_bounds = array<i64: 512, 128>}, {pipeline_mode = #tpu.pipeline_mode<synchronous>, transform_indices = @transform_6, window_bounds = array<i64: 1, 128>}, {transform_indices = @transform_7, window_bounds = array<i64: 16, 128>}]} {
    %c0 = arith.constant 0 : index
    %c0_0 = arith.constant 0 : index
    %0 = vector.load %arg1[%c0, %c0_0] : memref<16x256xf32, #tpu.memory_space<vmem>>, vector<16x256xf32>
    %1 = arith.truncf %0 : vector<16x256xf32> to vector<16x256xbf16>
    %c0_1 = arith.constant 0 : index
    %c0_2 = arith.constant 0 : index
    %2 = vector.load %arg2[%c0_1, %c0_2] : memref<256x512xbf16, #tpu.memory_space<vmem>>, vector<256x512xbf16>
    %cst = arith.constant dense<0.000000e+00> : vector<16x512xf32>
    %3 = tpu.matmul %1, %2, %cst {dimension_numbers = #tpu.dot_dimension_numbers<[1], [0], [0], [1], [0, 0, 1, 1], [], []>} : vector<16x256xbf16>, vector<256x512xbf16>, vector<16x512xf32> -> vector<16x512xf32>
    %c0_3 = arith.constant 0 : index
    %c0_4 = arith.constant 0 : index
    %4 = vector.load %arg3[%c0_3, %c0_4] : memref<1x512xf32, #tpu.memory_space<vmem>>, vector<1x512xf32>
    %5 = vector.broadcast %4 : vector<1x512xf32> to vector<16x512xf32>
    %6 = arith.addf %3, %5 : vector<16x512xf32>
    %cst_5 = arith.constant 0.000000e+00 : f32
    %7 = vector.broadcast %cst_5 : f32 to vector<16x512xf32>
    %8 = arith.maximumf %6, %7 : vector<16x512xf32>
    %9 = arith.truncf %8 : vector<16x512xf32> to vector<16x512xbf16>
    %c0_6 = arith.constant 0 : index
    %c0_7 = arith.constant 0 : index
    %10 = vector.load %arg4[%c0_6, %c0_7] : memref<512x512xbf16, #tpu.memory_space<vmem>>, vector<512x512xbf16>
    %cst_8 = arith.constant dense<0.000000e+00> : vector<16x512xf32>
    %11 = tpu.matmul %9, %10, %cst_8 {dimension_numbers = #tpu.dot_dimension_numbers<[1], [0], [0], [1], [0, 0, 1, 1], [], []>} : vector<16x512xbf16>, vector<512x512xbf16>, vector<16x512xf32> -> vector<16x512xf32>
    %c0_9 = arith.constant 0 : index
    %c0_10 = arith.constant 0 : index
    %12 = vector.load %arg5[%c0_9, %c0_10] : memref<1x512xf32, #tpu.memory_space<vmem>>, vector<1x512xf32>
    %13 = vector.broadcast %12 : vector<1x512xf32> to vector<16x512xf32>
    %14 = arith.addf %11, %13 : vector<16x512xf32>
    %cst_11 = arith.constant 0.000000e+00 : f32
    %15 = vector.broadcast %cst_11 : f32 to vector<16x512xf32>
    %16 = arith.maximumf %14, %15 : vector<16x512xf32>
    %17 = arith.truncf %16 : vector<16x512xf32> to vector<16x512xbf16>
    %c0_12 = arith.constant 0 : index
    %c0_13 = arith.constant 0 : index
    %18 = vector.load %arg6[%c0_12, %c0_13] : memref<512x128xbf16, #tpu.memory_space<vmem>>, vector<512x128xbf16>
    %cst_14 = arith.constant dense<0.000000e+00> : vector<16x128xf32>
    %19 = tpu.matmul %17, %18, %cst_14 {dimension_numbers = #tpu.dot_dimension_numbers<[1], [0], [0], [1], [0, 0, 1, 1], [], []>} : vector<16x512xbf16>, vector<512x128xbf16>, vector<16x128xf32> -> vector<16x128xf32>
    %c0_15 = arith.constant 0 : index
    %c0_16 = arith.constant 0 : index
    %20 = vector.load %arg7[%c0_15, %c0_16] : memref<1x128xf32, #tpu.memory_space<vmem>>, vector<1x128xf32>
    %21 = vector.broadcast %20 : vector<1x128xf32> to vector<16x128xf32>
    %22 = arith.addf %19, %21 : vector<16x128xf32>
    %23 = arith.truncf %22 : vector<16x128xf32> to vector<16x128xbf16>
    %c0_17 = arith.constant 0 : index
    %c0_18 = arith.constant 0 : index
    %24 = vector.load %arg8[%c0_17, %c0_18] : memref<16x128xbf16, #tpu.memory_space<vmem>>, vector<16x128xbf16>
    tpu.vector_store %arg8[%c0_17, %c0_18], %23 {strides = array<i32>} : memref<16x128xbf16, #tpu.memory_space<vmem>>, vector<16x128xbf16>,
    return
  }
  func.func @transform_0(%arg0: i32) -> (i32, i32) {
    %c0_i32 = arith.constant 0 : i32
    %c0_i32_0 = arith.constant 0 : i32
    return %arg0, %c0_i32 : i32, i32
  }
  func.func @transform_1(%arg0: i32) -> (i32, i32) {
    %c0_i32 = arith.constant 0 : i32
    %c0_i32_0 = arith.constant 0 : i32
    %c0_i32_1 = arith.constant 0 : i32
    return %c0_i32, %c0_i32_0 : i32, i32
  }
  func.func @transform_2(%arg0: i32) -> (i32, i32) {
    %c0_i32 = arith.constant 0 : i32
    %c0_i32_0 = arith.constant 0 : i32
    %c0_i32_1 = arith.constant 0 : i32
    return %c0_i32, %c0_i32_0 : i32, i32
  }
  func.func @transform_3(%arg0: i32) -> (i32, i32) {
    %c0_i32 = arith.constant 0 : i32
    %c0_i32_0 = arith.constant 0 : i32
    %c0_i32_1 = arith.constant 0 : i32
    return %c0_i32, %c0_i32_0 : i32, i32
  }
  func.func @transform_4(%arg0: i32) -> (i32, i32) {
    %c0_i32 = arith.constant 0 : i32
    %c0_i32_0 = arith.constant 0 : i32
    %c0_i32_1 = arith.constant 0 : i32
    return %c0_i32, %c0_i32_0 : i32, i32
  }
  func.func @transform_5(%arg0: i32) -> (i32, i32) {
    %c0_i32 = arith.constant 0 : i32
    %c0_i32_0 = arith.constant 0 : i32
    %c0_i32_1 = arith.constant 0 : i32
    return %c0_i32, %c0_i32_0 : i32, i32
  }
  func.func @transform_6(%arg0: i32) -> (i32, i32) {
    %c0_i32 = arith.constant 0 : i32
    %c0_i32_0 = arith.constant 0 : i32
    %c0_i32_1 = arith.constant 0 : i32
    return %c0_i32, %c0_i32_0 : i32, i32
  }
  func.func @transform_7(%arg0: i32) -> (i32, i32) {
    %c0_i32 = arith.constant 0 : i32
    %c0_i32_0 = arith.constant 0 : i32
    return %arg0, %c0_i32 : i32, i32
  }
}

</mosaic_0001>

<bundles_post_ra>
// kernel: tpu_custom_call.1
= control target key start
LH: loop header
LB: loop body
LE: loop exit
PB: predicated region body
PF: predicated region fallthrough
CT: control target
= control target key end

     0   :  { %12 = vsyncpa [#allocation3], 0  ;;  %s2855_s0 = inlined_call_operand.hbm [shape: f32[16,256], index: 0, kind: input, shape index: {}]   ;;  %s2856_s1 = inlined_call_operand.hbm [shape: bf16[256,512], index: 1, kind: input, shape index: {}]   ;;  %s2857_s2 = inlined_call_operand.vmem [shape: f32[1,512], index: 2, kind: input, shape index: {}]   ;;  %s2858_s3 = inlined_call_operand.hbm [shape: bf16[512,512], index: 3, kind: input, shape index: {}]   ;;  %s2859_s4 = inlined_call_operand.vmem [shape: f32[1,512], index: 4, kind: input, shape index: {}]   ;;  %s2860_s5 = inlined_call_operand.hbm [shape: bf16[512,128], index: 5, kind: input, shape index: {}]   ;;  %s2861_s6 = inlined_call_operand.vmem [shape: f32[1,128], index: 6, kind: input, shape index: {}]   ;;  %s2862_s7 = inlined_call_operand.hbm [shape: bf16[16,128], index: 7, kind: output, shape index: {}]  }
   0x1   :  { %13 = vsyncpa [#allocation6], 0 }
   0x2   :  { %14 = vsyncpa [#allocation9], 0 }
   0x3   :  { %15 = vsyncpa [#allocation4], 0  ;;  %s2682_s24 = smov [#allocation5]   ;;  %s2683_s26 = smov [#allocation2]  }
   0x4   :  { %s33_s25 = sshll.u32 %s2682_s24, 4  ;;  %s21_s27 = sshll.u32 %s2683_s26, 4  ;;  %s34_s25 = int_to_ptr.vmem [resolvable:$true] %s33_s25  ;;  %s2731_s27 = int_to_ptr.vmem [resolvable:$true] %s21_s27 }
   0x5   :  { %s2564_s30 = scalar_lea.hbm %s2856_s1, 8192 }
   0x6   :  { %p2565_p0 = scmp.ne.s32.totalorder %s2856_s1, %s2564_s30  ;;  %p2568_p1 = scmp.lt.u32.totalorder %s2564_s30, %s2856_s1 }
   0x8   :  { %p2570_p2 = pnand %p2568_p1, %p2565_p0 }
   0xa   :  { %2573 = shalt.err (!%p2570_p2)
}
   0xb   :  { %s2574_s12 = scalar_lea.vmem %s34_s25, 8192  ;;  %p2579_p4 = scmp.lt.s32.totalorder %s34_s25, %s34_s25 }
   0xc   :  { %p2575_p3 = scmp.ne.s32.totalorder %s34_s25, %s2574_s12  ;;  %p2580_p5 = scmp.lt.s32.totalorder %s2574_s12, %s2574_s12 }
   0xe   :  { %p2581_p6 = por %p2580_p5, %p2579_p4 }
  0x10   :  { %p2582_p7 = pnand %p2581_p6, %p2575_p3 }
  0x12   :  { %2585 = shalt.err (!%p2582_p7)
}
  0x13   :  { %s2684_s13 = smov 256   ;;  %s2685_s14 = smov 16  }
  0x14   :  { %39 = dma.hbm_to_vmem [thread:$0]  %s2856_s1, 8192, %s34_s25, [#allocation6], %s2684_s13, %s2684_s13, %s2685_s14  }
  0x15   :  { %s2586_s19 = scalar_lea.hbm %s2855_s0, 512 }
  0x16   :  { %p2587_p8 = scmp.ne.s32.totalorder %s2855_s0, %s2586_s19  ;;  %p2590_p9 = scmp.lt.u32.totalorder %s2586_s19, %s2855_s0 }
  0x18   :  { %p2592_p10 = pnand %p2590_p9, %p2587_p8 }
  0x1a   :  { %2595 = shalt.err (!%p2592_p10)
}
  0x1b   :  { %s2596_s24 = scalar_lea.vmem %s2731_s27, 512  ;;  %p2601_p12 = scmp.lt.s32.totalorder %s2731_s27, %s2731_s27 }
  0x1c   :  { %p2597_p11 = scmp.ne.s32.totalorder %s2731_s27, %s2596_s24  ;;  %p2602_p13 = scmp.lt.s32.totalorder %s2596_s24, %s2596_s24 }
  0x1e   :  { %p2603_p0 = por %p2602_p13, %p2601_p12 }
  0x20   :  { %p2604_p1 = pnand %p2603_p0, %p2597_p11 }
  0x22   :  { %2607 = shalt.err (!%p2604_p1)
}
  0x23   :  { %27 = dma.hbm_to_vmem [thread:$0]  %s2855_s0, 512, %s2731_s27, [#allocation3], %s2684_s13, %s2684_s13, %s2685_s14  }
  0x24   :  { %s2686_s26 = smov [#allocation7]   ;;  %s2687_s29 = smov [#allocation8]  }
  0x25   :  { %s47_s28 = sshll.u32 %s2686_s26, 4  ;;  %s61_s30 = sshll.u32 %s2687_s29, 4  ;;  %s48_s28 = int_to_ptr.vmem [resolvable:$true] %s47_s28  ;;  %s2768_s30 = int_to_ptr.vmem [resolvable:$true] %s61_s30 }
  0x26   :  { %s2608_s10 = scalar_lea.hbm %s2858_s3, 16384 }
  0x27   :  { %p2609_p2 = scmp.ne.s32.totalorder %s2858_s3, %s2608_s10  ;;  %p2612_p3 = scmp.lt.u32.totalorder %s2608_s10, %s2858_s3 }
  0x29   :  { %p2614_p4 = pnand %p2612_p3, %p2609_p2 }
  0x2b   :  { %2617 = shalt.err (!%p2614_p4)
}
  0x2c   :  { %s2618_s0 = scalar_lea.vmem %s48_s28, 16384  ;;  %p2623_p6 = scmp.lt.s32.totalorder %s48_s28, %s48_s28 }
  0x2d   :  { %p2619_p5 = scmp.ne.s32.totalorder %s48_s28, %s2618_s0  ;;  %p2624_p7 = scmp.lt.s32.totalorder %s2618_s0, %s2618_s0 }
  0x2f   :  { %p2625_p8 = por %p2624_p7, %p2623_p6 }
  0x31   :  { %p2626_p9 = pnand %p2625_p8, %p2619_p5 }
  0x33   :  { %2629 = shalt.err (!%p2626_p9)
}
  0x34   :  { %53 = dma.hbm_to_vmem [thread:$0]  %s2858_s3, 16384, %s48_s28, [#allocation6], %s2684_s13, %s2684_s13, %s2685_s14  }
  0x35   :  { %s2630_s20 = scalar_lea.hbm %s2860_s5, 4096 }
  0x36   :  { %p2631_p10 = scmp.ne.s32.totalorder %s2860_s5, %s2630_s20  ;;  %p2634_p11 = scmp.lt.u32.totalorder %s2630_s20, %s2860_s5 }
  0x38   :  { %p2636_p12 = pnand %p2634_p11, %p2631_p10 }
  0x3a   :  { %2639 = shalt.err (!%p2636_p12)
}
  0x3b   :  { %s2640_s1 = scalar_lea.vmem %s2768_s30, 4096  ;;  %p2645_p0 = scmp.lt.s32.totalorder %s2768_s30, %s2768_s30 }
  0x3c   :  { %p2641_p13 = scmp.ne.s32.totalorder %s2768_s30, %s2640_s1  ;;  %p2646_p1 = scmp.lt.s32.totalorder %s2640_s1, %s2640_s1 }
  0x3e   :  { %p2647_p2 = por %p2646_p1, %p2645_p0 }
  0x40   :  { %p2648_p3 = pnand %p2647_p2, %p2641_p13 }
  0x42   :  { %2651 = shalt.err (!%p2648_p3)
}
  0x43   :  { %s2688_s3 = smov 64   ;;  %s2689_s13 = smov 4  }
  0x44   :  { %67 = dma.hbm_to_vmem [thread:$0]  %s2860_s5, 4096, %s2768_s30, [#allocation9], %s2688_s3, %s2688_s3, %s2689_s13  }
  0x45   :  { %2674 = dma.done.wait [#allocation3], 512  }
  0x46   :  { %2675 = vsyncadd [#allocation3], 4294966784 }
  0x47   :  { %2676 = dma.done.wait [#allocation6], 24576  }
  0x48   :  { %2677 = vsyncadd [#allocation6], 4294942720 }
  0x49   :  { %2678 = dma.done.wait [#allocation9], 4096  }
  0x4a   :  { %2679 = vsyncadd [#allocation9], 4294963200  ;;  %v2244_v0 = vld [vmem:[#allocation5 + $0x4] ss:$16 sps:$4 sm:$0xff]   ;;  %v2246_v1 = vld [vmem:[#allocation5] ss:$16 sps:$4 sm:$0xff]  }
  0x4b   :  { %495 = vmatprep.subr.bf16.mxu0 %v2244_v0  ;;  %v2247_v2 = vld [vmem:[#allocation5 + $0x24] ss:$16 sps:$4 sm:$0xff]   ;;  %v2249_v3 = vld [vmem:[#allocation5 + $0x20] ss:$16 sps:$4 sm:$0xff]   ;;  %v2291_v13 = vld [vmem:[#allocation5 + $0xc] ss:$16 sps:$4 sm:$0xff]  }
  0x4c   :  { %496 = vmatpush1.bf16.msra.mxu0 %v2246_v1  ;;  %v2250_v4 = vld [vmem:[#allocation5 + $0x44] ss:$16 sps:$4 sm:$0xff]   ;;  %v2252_v5 = vld [vmem:[#allocation5 + $0x40] ss:$16 sps:$4 sm:$0xff]   ;;  %v2294_v14 = vld [vmem:[#allocation5 + $0x8] ss:$16 sps:$4 sm:$0xff]   ;;  %538 = vmatprep.subr.bf16.mxu1 %v2291_v13 }
  0x4d   :  { %497 = vmatprep.subr.bf16.mxu0 %v2247_v2  ;;  %v2253_v6 = vld [vmem:[#allocation5 + $0x64] ss:$16 sps:$4 sm:$0xff]   ;;  %v2255_v7 = vld [vmem:[#allocation5 + $0x60] ss:$16 sps:$4 sm:$0xff]   ;;  %v84_v15 = vld [vmem:[#allocation2 + $0x8] sm:$0xff]  ;;  %539 = vmatpush1.bf16.msra.mxu1 %v2294_v14  ;;  %s2690_s30 = smov [#allocation10]  }
  0x4e   :  { %v2256_v8 = vld [vmem:[#allocation5 + $0x84] ss:$16 sps:$4 sm:$0xff]   ;;  %v2258_v9 = vld [vmem:[#allocation5 + $0x80] ss:$16 sps:$4 sm:$0xff]   ;;  %v86_v18 = vld [vmem:[#allocation2 + $0x18] sm:$0xff]  ;;  %s1927_s8 = sshll.u32 %s2690_s30, 4  ;;  %s1928_s8 = int_to_ptr.vmem [resolvable:$true] %s1927_s8 }
  0x4f   :  { %v2259_v10 = vld [vmem:[#allocation5 + $0xa4] ss:$16 sps:$4 sm:$0xff]   ;;  %v2261_v11 = vld [vmem:[#allocation5 + $0xa0] ss:$16 sps:$4 sm:$0xff]   ;;  %v88_v19 = vpack.c.bf16 %v86_v18, %v84_v15  ;;  %v2295_v20 = vld [vmem:[#allocation5 + $0x2c] ss:$16 sps:$4 sm:$0xff]   ;;  %p2657_p5 = scmp.lt.s32.totalorder %s1928_s8, %s1928_s8 }
  0x50   :  { %498 = vmatpush1.bf16.msra.mxu0 %v2249_v3  ;;  %v2262_v12 = vld [vmem:[#allocation5 + $0xc4] ss:$16 sps:$4 sm:$0xff]   ;;  %v2264_v16 = vld [vmem:[#allocation5 + $0xc0] ss:$16 sps:$4 sm:$0xff]   ;;  %v2297_v21 = vld [vmem:[#allocation5 + $0x28] ss:$16 sps:$4 sm:$0xff]   ;;  %540 = vmatprep.subr.bf16.mxu1 %v2295_v20 }
  0x51   :  { %499 = vmatprep.subr.bf16.mxu0 %v2250_v4  ;;  %v2265_v17 = vld [vmem:[#allocation5 + $0xe4] ss:$16 sps:$4 sm:$0xff]   ;;  %527 = vmatprep.mubr.bf16.mxu0 %v88_v19  ;;  %v2298_v22 = vld [vmem:[#allocation5 + $0x4c] ss:$16 sps:$4 sm:$0xff]   ;;  %v2267_v23 = vld [vmem:[#allocation5 + $0xe0] ss:$16 sps:$4 sm:$0xff]  }
  0x52   :  { %v2268_v24 = vld [vmem:[#allocation5 + $0x104] ss:$16 sps:$4 sm:$0xff]   ;;  %570 = vmatprep.mubr.bf16.mxu1 %v88_v19  ;;  %541 = vmatpush1.bf16.msra.mxu1 %v2297_v21  ;;  %v2300_v25 = vld [vmem:[#allocation5 + $0x48] ss:$16 sps:$4 sm:$0xff]   ;;  %v2301_v26 = vld [vmem:[#allocation5 + $0x6c] ss:$16 sps:$4 sm:$0xff]  }
  0x53   :  { %542 = vmatprep.subr.bf16.mxu1 %v2298_v22  ;;  %v2270_v27 = vld [vmem:[#allocation5 + $0x100] ss:$16 sps:$4 sm:$0xff]   ;;  %v2271_v28 = vld [vmem:[#allocation5 + $0x124] ss:$16 sps:$4 sm:$0xff]   ;;  %v2303_v29 = vld [vmem:[#allocation5 + $0x68] ss:$16 sps:$4 sm:$0xff]  }
  0x54   :  { %500 = vmatpush1.bf16.msra.mxu0 %v2252_v5  ;;  %v2304_v30 = vld [vmem:[#allocation5 + $0x8c] ss:$16 sps:$4 sm:$0xff]   ;;  %v2273_v31 = vld [vmem:[#allocation5 + $0x120] ss:$16 sps:$4 sm:$0xff]   ;;  %v2274_v32 = vld [vmem:[#allocation5 + $0x144] ss:$16 sps:$4 sm:$0xff]  }
  0x55   :  { %501 = vmatprep.subr.bf16.mxu0 %v2253_v6  ;;  %v2306_v33 = vld [vmem:[#allocation5 + $0x88] ss:$16 sps:$4 sm:$0xff]   ;;  %v2307_v34 = vld [vmem:[#allocation5 + $0xac] ss:$16 sps:$4 sm:$0xff]   ;;  %v2276_v35 = vld [vmem:[#allocation5 + $0x140] ss:$16 sps:$4 sm:$0xff]  }
  0x56   :  { %543 = vmatpush1.bf16.msra.mxu1 %v2300_v25  ;;  %v2277_v36 = vld [vmem:[#allocation5 + $0x164] ss:$16 sps:$4 sm:$0xff]   ;;  %v2309_v37 = vld [vmem:[#allocation5 + $0xa8] ss:$16 sps:$4 sm:$0xff]   ;;  %v2310_v38 = vld [vmem:[#allocation5 + $0xcc] ss:$16 sps:$4 sm:$0xff]  }
  0x57   :  { %544 = vmatprep.subr.bf16.mxu1 %v2301_v26  ;;  %v2279_v39 = vld [vmem:[#allocation5 + $0x160] ss:$16 sps:$4 sm:$0xff]   ;;  %v2280_v40 = vld [vmem:[#allocation5 + $0x184] ss:$16 sps:$4 sm:$0xff]   ;;  %v2312_v41 = vld [vmem:[#allocation5 + $0xc8] ss:$16 sps:$4 sm:$0xff]  }
  0x58   :  { %502 = vmatpush1.bf16.msra.mxu0 %v2255_v7  ;;  %v2313_v42 = vld [vmem:[#allocation5 + $0xec] ss:$16 sps:$4 sm:$0xff]   ;;  %v2282_v43 = vld [vmem:[#allocation5 + $0x180] ss:$16 sps:$4 sm:$0xff]   ;;  %v2283_v44 = vld [vmem:[#allocation5 + $0x1a4] ss:$16 sps:$4 sm:$0xff]  }
  0x59   :  { %503 = vmatprep.subr.bf16.mxu0 %v2256_v8  ;;  %v2315_v45 = vld [vmem:[#allocation5 + $0xe8] ss:$16 sps:$4 sm:$0xff]   ;;  %v2316_v46 = vld [vmem:[#allocation5 + $0x10c] ss:$16 sps:$4 sm:$0xff]   ;;  %v2285_v47 = vld [vmem:[#allocation5 + $0x1a0] ss:$16 sps:$4 sm:$0xff]  }
  0x5a   :  { %545 = vmatpush1.bf16.msra.mxu1 %v2303_v29  ;;  %v2286_v48 = vld [vmem:[#allocation5 + $0x1c4] ss:$16 sps:$4 sm:$0xff]   ;;  %v2318_v49 = vld [vmem:[#allocation5 + $0x108] ss:$16 sps:$4 sm:$0xff]   ;;  %v2319_v50 = vld [vmem:[#allocation5 + $0x12c] ss:$16 sps:$4 sm:$0xff]  }
  0x5b   :  { %546 = vmatprep.subr.bf16.mxu1 %v2304_v30  ;;  %v2288_v51 = vld [vmem:[#allocation5 + $0x1c0] ss:$16 sps:$4 sm:$0xff]   ;;  %v2289_v52 = vld [vmem:[#allocation5 + $0x1e4] ss:$16 sps:$4 sm:$0xff]   ;;  %v2321_v53 = vld [vmem:[#allocation5 + $0x128] ss:$16 sps:$4 sm:$0xff]  }
  0x5c   :  { %504 = vmatpush1.bf16.msra.mxu0 %v2258_v9  ;;  %v2322_v54 = vld [vmem:[#allocation5 + $0x14c] ss:$16 sps:$4 sm:$0xff]   ;;  %v2293_v55 = vld [vmem:[#allocation5 + $0x1e0] ss:$16 sps:$4 sm:$0xff]   ;;  %v2324_v58 = vld [vmem:[#allocation5 + $0x148] ss:$16 sps:$4 sm:$0xff]  }
  0x5d   :  { %505 = vmatprep.subr.bf16.mxu0 %v2259_v10  ;;  %v83_v56 = vld [vmem:[#allocation2] sm:$0xff]  ;;  %v85_v57 = vld [vmem:[#allocation2 + $0x10] sm:$0xff]  ;;  %v2325_v60 = vld [vmem:[#allocation5 + $0x16c] ss:$16 sps:$4 sm:$0xff]  }
  0x5e   :  { %547 = vmatpush1.bf16.msra.mxu1 %v2306_v33  ;;  %v2342_v59 = vld [vmem:[#allocation7 + $0x4] ss:$16 sps:$4 sm:$0xff]   ;;  %v87_v61 = vpack.c.bf16 %v85_v57, %v83_v56  ;;  %v2327_v62 = vld [vmem:[#allocation5 + $0x168] ss:$16 sps:$4 sm:$0xff]   ;;  %v2340_v63 = vld [vmem:[#allocation7] ss:$16 sps:$4 sm:$0xff]  }
  0x5f   :  { %548 = vmatprep.subr.bf16.mxu1 %v2307_v34  ;;  %v2348_v0 = vld [vmem:[#allocation7 + $0x24] ss:$16 sps:$4 sm:$0xff]   ;;  %v2328_v1 = vld [vmem:[#allocation5 + $0x18c] ss:$16 sps:$4 sm:$0xff]   ;;  %v2330_v2 = vld [vmem:[#allocation5 + $0x188] ss:$16 sps:$4 sm:$0xff]  }
  0x60   :  { %506 = vmatpush1.bf16.msra.mxu0 %v2261_v11  ;;  %v2346_v3 = vld [vmem:[#allocation7 + $0x20] ss:$16 sps:$4 sm:$0xff]   ;;  %v2354_v4 = vld [vmem:[#allocation7 + $0x44] ss:$16 sps:$4 sm:$0xff]   ;;  %v2331_v5 = vld [vmem:[#allocation5 + $0x1ac] ss:$16 sps:$4 sm:$0xff]  }
  0x61   :  { %507 = vmatprep.subr.bf16.mxu0 %v2262_v12  ;;  %v2333_v6 = vld [vmem:[#allocation5 + $0x1a8] ss:$16 sps:$4 sm:$0xff]   ;;  %v2352_v7 = vld [vmem:[#allocation7 + $0x40] ss:$16 sps:$4 sm:$0xff]   ;;  %v2360_v8 = vld [vmem:[#allocation7 + $0x64] ss:$16 sps:$4 sm:$0xff]  }
  0x62   :  { %549 = vmatpush1.bf16.msra.mxu1 %v2309_v37  ;;  %v2334_v9 = vld [vmem:[#allocation5 + $0x1cc] ss:$16 sps:$4 sm:$0xff]   ;;  %v2336_v10 = vld [vmem:[#allocation5 + $0x1c8] ss:$16 sps:$4 sm:$0xff]   ;;  %v2358_v11 = vld [vmem:[#allocation7 + $0x60] ss:$16 sps:$4 sm:$0xff]  }
  0x63   :  { %550 = vmatprep.subr.bf16.mxu1 %v2310_v38  ;;  %v2366_v12 = vld [vmem:[#allocation7 + $0x84] ss:$16 sps:$4 sm:$0xff]   ;;  %v2337_v13 = vld [vmem:[#allocation5 + $0x1ec] ss:$16 sps:$4 sm:$0xff]   ;;  %v2339_v14 = vld [vmem:[#allocation5 + $0x1e8] ss:$16 sps:$4 sm:$0xff]  }
  0x64   :  { %508 = vmatpush1.bf16.msra.mxu0 %v2264_v16  ;;  %v2364_v15 = vld [vmem:[#allocation7 + $0x80] ss:$16 sps:$4 sm:$0xff]   ;;  %v2372_v16 = vld [vmem:[#allocation7 + $0xa4] ss:$16 sps:$4 sm:$0xff]   ;;  %v2343_v19 = vld [vmem:[#allocation7 + $0x8] ss:$16 sps:$4 sm:$0xff]  }
  0x65   :  { %509 = vmatprep.subr.bf16.mxu0 %v2265_v17  ;;  %v2345_v17 = vld [vmem:[#allocation7 + $0xc] ss:$16 sps:$4 sm:$0xff]   ;;  %v2370_v18 = vld [vmem:[#allocation7 + $0xa0] ss:$16 sps:$4 sm:$0xff]   ;;  %v2378_v20 = vld [vmem:[#allocation7 + $0xc4] ss:$16 sps:$4 sm:$0xff]  }
  0x66   :  { %551 = vmatpush1.bf16.msra.mxu1 %v2312_v41  ;;  %v2351_v21 = vld [vmem:[#allocation7 + $0x2c] ss:$16 sps:$4 sm:$0xff]   ;;  %v2376_v22 = vld [vmem:[#allocation7 + $0xc0] ss:$16 sps:$4 sm:$0xff]   ;;  %v2409_v57 = vld [vmem:[#allocation7 + $0x168] ss:$16 sps:$4 sm:$0xff]  }
  0x67   :  { %552 = vmatprep.subr.bf16.mxu1 %v2313_v42  ;;  %v2357_v25 = vld [vmem:[#allocation7 + $0x4c] ss:$16 sps:$4 sm:$0xff]   ;;  %v2382_v26 = vld [vmem:[#allocation7 + $0xe0] ss:$16 sps:$4 sm:$0xff]  }
  0x68   :  { %510 = vmatpush1.bf16.msra.mxu0 %v2267_v23  ;;  %v2349_v23 = vld [vmem:[#allocation7 + $0x28] ss:$16 sps:$4 sm:$0xff]   ;;  %v2363_v29 = vld [vmem:[#allocation7 + $0x6c] ss:$16 sps:$4 sm:$0xff]   ;;  %v2388_v30 = vld [vmem:[#allocation7 + $0x100] ss:$16 sps:$4 sm:$0xff]  }
  0x69   :  { %511 = vmatprep.subr.bf16.mxu0 %v2268_v24  ;;  %v2384_v24 = vld [vmem:[#allocation7 + $0xe4] ss:$16 sps:$4 sm:$0xff]   ;;  %v2369_v33 = vld [vmem:[#allocation7 + $0x8c] ss:$16 sps:$4 sm:$0xff]   ;;  %v2394_v34 = vld [vmem:[#allocation7 + $0x120] ss:$16 sps:$4 sm:$0xff]  }
  0x6a   :  { %553 = vmatpush1.bf16.msra.mxu1 %v2315_v45  ;;  %v2375_v37 = vld [vmem:[#allocation7 + $0xac] ss:$16 sps:$4 sm:$0xff]   ;;  %v2400_v38 = vld [vmem:[#allocation7 + $0x140] ss:$16 sps:$4 sm:$0xff]  }
  0x6b   :  { %554 = vmatprep.subr.bf16.mxu1 %v2316_v46  ;;  %v2381_v41 = vld [vmem:[#allocation7 + $0xcc] ss:$16 sps:$4 sm:$0xff]   ;;  %v2406_v42 = vld [vmem:[#allocation7 + $0x160] ss:$16 sps:$4 sm:$0xff]  }
  0x6c   :  { %512 = vmatpush1.bf16.msra.mxu0 %v2270_v27  ;;  %v2355_v27 = vld [vmem:[#allocation7 + $0x48] ss:$16 sps:$4 sm:$0xff]   ;;  %v2387_v45 = vld [vmem:[#allocation7 + $0xec] ss:$16 sps:$4 sm:$0xff]   ;;  %v2412_v46 = vld [vmem:[#allocation7 + $0x180] ss:$16 sps:$4 sm:$0xff]  }
  0x6d   :  { %513 = vmatprep.subr.bf16.mxu0 %v2271_v28  ;;  %v2390_v28 = vld [vmem:[#allocation7 + $0x104] ss:$16 sps:$4 sm:$0xff]   ;;  %v2411_v56 = vld [vmem:[#allocation7 + $0x16c] ss:$16 sps:$4 sm:$0xff]  }
  0x6e   :  { %555 = vmatpush1.bf16.msra.mxu1 %v2318_v49  ;;  %v2393_v49 = vld [vmem:[#allocation7 + $0x10c] ss:$16 sps:$4 sm:$0xff]  }
  0x6f   :  { %556 = vmatprep.subr.bf16.mxu1 %v2319_v50  ;;  %v2418_v50 = vld [vmem:[#allocation7 + $0x1a0] ss:$16 sps:$4 sm:$0xff]  }
  0x70   :  { %514 = vmatpush1.bf16.msra.mxu0 %v2273_v31  ;;  %v2361_v31 = vld [vmem:[#allocation7 + $0x68] ss:$16 sps:$4 sm:$0xff]  }
  0x71   :  { %515 = vmatprep.subr.bf16.mxu0 %v2274_v32  ;;  %v2396_v32 = vld [vmem:[#allocation7 + $0x124] ss:$16 sps:$4 sm:$0xff]  }
  0x72   :  { %557 = vmatpush1.bf16.msra.mxu1 %v2321_v53  ;;  %v2397_v53 = vld [vmem:[#allocation7 + $0x128] ss:$16 sps:$4 sm:$0xff]  }
  0x73   :  { %558 = vmatprep.subr.bf16.mxu1 %v2322_v54  ;;  %v2405_v54 = vld [vmem:[#allocation7 + $0x14c] ss:$16 sps:$4 sm:$0xff]  }
  0x74   :  { %516 = vmatpush1.bf16.msra.mxu0 %v2276_v35  ;;  %v2367_v35 = vld [vmem:[#allocation7 + $0x88] ss:$16 sps:$4 sm:$0xff]  }
  0x75   :  { %517 = vmatprep.subr.bf16.mxu0 %v2277_v36  ;;  %v2402_v36 = vld [vmem:[#allocation7 + $0x144] ss:$16 sps:$4 sm:$0xff]  }
  0x76   :  { %559 = vmatpush1.bf16.msra.mxu1 %v2324_v58  ;;  %v2417_v58 = vld [vmem:[#allocation7 + $0x18c] ss:$16 sps:$4 sm:$0xff]  }
  0x77   :  { %560 = vmatprep.subr.bf16.mxu1 %v2325_v60  ;;  %v2423_v60 = vld [vmem:[#allocation7 + $0x1ac] ss:$16 sps:$4 sm:$0xff]  }
  0x78   :  { %518 = vmatpush1.bf16.msra.mxu0 %v2279_v39  ;;  %v2373_v39 = vld [vmem:[#allocation7 + $0xa8] ss:$16 sps:$4 sm:$0xff]  }
  0x79   :  { %519 = vmatprep.subr.bf16.mxu0 %v2280_v40  ;;  %v2408_v40 = vld [vmem:[#allocation7 + $0x164] ss:$16 sps:$4 sm:$0xff]  }
  0x7a   :  { %561 = vmatpush1.bf16.msra.mxu1 %v2327_v62  ;;  %v2426_v62 = vld [vmem:[#allocation7 + $0x1c4] ss:$16 sps:$4 sm:$0xff]  }
  0x7b   :  { %562 = vmatprep.subr.bf16.mxu1 %v2328_v1  ;;  %v2427_v1 = vld [vmem:[#allocation7 + $0x1c8] ss:$16 sps:$4 sm:$0xff]  }
  0x7c   :  { %520 = vmatpush1.bf16.msra.mxu0 %v2282_v43  ;;  %v2379_v43 = vld [vmem:[#allocation7 + $0xc8] ss:$16 sps:$4 sm:$0xff]  }
  0x7d   :  { %521 = vmatprep.subr.bf16.mxu0 %v2283_v44  ;;  %v2414_v44 = vld [vmem:[#allocation7 + $0x184] ss:$16 sps:$4 sm:$0xff]  }
  0x7e   :  { %563 = vmatpush1.bf16.msra.mxu1 %v2330_v2  ;;  %v2432_v2 = vld [vmem:[#allocation7 + $0x1e4] ss:$16 sps:$4 sm:$0xff]  }
  0x7f   :  { %564 = vmatprep.subr.bf16.mxu1 %v2331_v5  ;;  %v2433_v5 = vld [vmem:[#allocation7 + $0x1e8] ss:$16 sps:$4 sm:$0xff]  }
  0x80   :  { %522 = vmatpush1.bf16.msra.mxu0 %v2285_v47  ;;  %v2385_v47 = vld [vmem:[#allocation7 + $0xe8] ss:$16 sps:$4 sm:$0xff]  }
  0x81   :  { %523 = vmatprep.subr.bf16.mxu0 %v2286_v48  ;;  %v2420_v48 = vld [vmem:[#allocation7 + $0x1a4] ss:$16 sps:$4 sm:$0xff]  }
  0x82   :  { %565 = vmatpush1.bf16.msra.mxu1 %v2333_v6  ;;  %v2438_v6 = vld [vmem:[#allocation7 + $0x204] ss:$16 sps:$4 sm:$0xff]  }
  0x83   :  { %566 = vmatprep.subr.bf16.mxu1 %v2334_v9 }
  0x84   :  { %524 = vmatpush1.bf16.msra.mxu0 %v2288_v51  ;;  %v2391_v51 = vld [vmem:[#allocation7 + $0x108] ss:$16 sps:$4 sm:$0xff]  }
  0x85   :  { %525 = vmatprep.subr.bf16.mxu0 %v2289_v52  ;;  %v2399_v52 = vld [vmem:[#allocation7 + $0x12c] ss:$16 sps:$4 sm:$0xff]  }
  0x86   :  { %567 = vmatpush1.bf16.msra.mxu1 %v2336_v10 }
  0x87   :  { %568 = vmatprep.subr.bf16.mxu1 %v2337_v13 }
  0x88   :  { %526 = vmatpush1.bf16.msra.mxu0 %v2293_v55  ;;  %v2403_v55 = vld [vmem:[#allocation7 + $0x148] ss:$16 sps:$4 sm:$0xff]  }
  0x89   :  { %1383 = vmatprep.subr.bf16.mxu0 %v2342_v59  ;;  %v2415_v59 = vld [vmem:[#allocation7 + $0x188] ss:$16 sps:$4 sm:$0xff]  }
  0x8a   :  { %569 = vmatpush1.bf16.msra.mxu1 %v2339_v14 }
  0x8b   :  { %528 = vmatmul.mubr.bf16.vlgmr.msra.gmra.mrb[0].mxu0 %v87_v61  ;;  %1469 = vmatprep.subr.bf16.mxu1 %v2345_v17 }
  0x8c   :  { %1384 = vmatpush1.bf16.msra.mxu0 %v2340_v63  ;;  %v2429_v63 = vld [vmem:[#allocation7 + $0x1cc] ss:$16 sps:$4 sm:$0xff]  }
  0x8d   :  { %1385 = vmatprep.subr.bf16.mxu0 %v2348_v0  ;;  %571 = vmatmul.mubr.bf16.vlgmr.msra.gmra.mrb[0].mxu1 %v87_v61  ;;  %v2421_v61 = vld [vmem:[#allocation7 + $0x1a8] ss:$16 sps:$4 sm:$0xff]   ;;  %v2424_v0 = vld [vmem:[#allocation7 + $0x1c0] ss:$16 sps:$4 sm:$0xff]  }
  0x8e   :  { %1470 = vmatpush1.bf16.msra.mxu1 %v2343_v19 }
  0x8f   :  { %1471 = vmatprep.subr.bf16.mxu1 %v2351_v21 }
  0x90   :  { %1386 = vmatpush1.bf16.msra.mxu0 %v2346_v3  ;;  %v2435_v3 = vld [vmem:[#allocation7 + $0x1ec] ss:$16 sps:$4 sm:$0xff]  }
  0x91   :  { %1387 = vmatprep.subr.bf16.mxu0 %v2354_v4  ;;  %v2430_v4 = vld [vmem:[#allocation7 + $0x1e0] ss:$16 sps:$4 sm:$0xff]  }
  0x92   :  { %1472 = vmatpush1.bf16.msra.mxu1 %v2349_v23 }
  0x93   :  { %1473 = vmatprep.subr.bf16.mxu1 %v2357_v25 }
  0x94   :  { %1388 = vmatpush1.bf16.msra.mxu0 %v2352_v7  ;;  %v2441_v7 = vld [vmem:[#allocation7 + $0x20c] ss:$16 sps:$4 sm:$0xff]  }
  0x95   :  { %1389 = vmatprep.subr.bf16.mxu0 %v2360_v8  ;;  %v155_v8 = vlaneseq }
  0x96   :  { %1474 = vmatpush1.bf16.msra.mxu1 %v2355_v27 }
  0x97   :  { %1475 = vmatprep.subr.bf16.mxu1 %v2363_v29  ;;  %v2805_v9 = vshrl.u32 %v155_v8, 7  ;;  %v2436_v29 = vld [vmem:[#allocation7 + $0x200] ss:$16 sps:$4 sm:$0xff]   ;;  %v2475_v8 = vld [vmem:[#allocation7 + $0x2c8] ss:$16 sps:$4 sm:$0xff]  }
  0x98   :  { %1390 = vmatpush1.bf16.msra.mxu0 %v2358_v11  ;;  %v153_v11 = vld [vmem:[%s2857_s2] sm:$0xf] }
  0x99   :  { %1391 = vmatprep.subr.bf16.mxu0 %v2366_v12  ;;  %v157_v10 = vsub.s32 0, %v2805_v9  ;;  %v161_v12 = vsub.s32 1, %v2805_v9 }
  0x9a   :  { %1476 = vmatpush1.bf16.msra.mxu1 %v2361_v31  ;;  %v2444_v31 = vld [vmem:[#allocation7 + $0x224] ss:$16 sps:$4 sm:$0xff]  }
  0x9b   :  { %1477 = vmatprep.subr.bf16.mxu1 %v2369_v33  ;;  %v158_v13 = vrot.slane %v153_v11, %v157_v10  ;;  %v162_v14 = vrot.slane %v153_v11, %v161_v12  ;;  %v2442_v33 = vld [vmem:[#allocation7 + $0x220] ss:$16 sps:$4 sm:$0xff]  }
  0x9c   :  { %1392 = vmatpush1.bf16.msra.mxu0 %v2364_v15 }
  0x9d   :  { %1393 = vmatprep.subr.bf16.mxu0 %v2372_v16 }
  0x9e   :  { %1478 = vmatpush1.bf16.msra.mxu1 %v2367_v35  ;;  %v2450_v35 = vld [vmem:[#allocation7 + $0x244] ss:$16 sps:$4 sm:$0xff]  }
  0x9f   :  { %1479 = vmatprep.subr.bf16.mxu1 %v2375_v37  ;;  %v165_v37 = vsub.s32 2, %v2805_v9 }
  0xa0   :  { %1394 = vmatpush1.bf16.msra.mxu0 %v2370_v18 }
  0xa1   :  { %1395 = vmatprep.subr.bf16.mxu0 %v2378_v20 }
  0xa2   :  { %1480 = vmatpush1.bf16.msra.mxu1 %v2373_v39  ;;  %v2448_v39 = vld [vmem:[#allocation7 + $0x240] ss:$16 sps:$4 sm:$0xff]  }
  0xa3   :  { %1481 = vmatprep.subr.bf16.mxu1 %v2381_v41  ;;  %v2456_v41 = vld [vmem:[#allocation7 + $0x264] ss:$16 sps:$4 sm:$0xff]  }
  0xa4   :  { %1396 = vmatpush1.bf16.msra.mxu0 %v2376_v22 }
  0xa5   :  { %1397 = vmatprep.subr.bf16.mxu0 %v2384_v24 }
  0xa6   :  { %1482 = vmatpush1.bf16.msra.mxu1 %v2379_v43  ;;  %v166_v43 = vrot.slane %v153_v11, %v165_v37 }
  0xa7   :  { %1483 = vmatprep.subr.bf16.mxu1 %v2387_v45  ;;  %v2454_v45 = vld [vmem:[#allocation7 + $0x260] ss:$16 sps:$4 sm:$0xff]  }
  0xa8   :  { %1398 = vmatpush1.bf16.msra.mxu0 %v2382_v26 }
  0xa9   :  { %1399 = vmatprep.subr.bf16.mxu0 %v2390_v28 }
  0xaa   :  { %1484 = vmatpush1.bf16.msra.mxu1 %v2385_v47  ;;  %v2462_v47 = vld [vmem:[#allocation7 + $0x284] ss:$16 sps:$4 sm:$0xff]  }
  0xab   :  { %1485 = vmatprep.subr.bf16.mxu1 %v2393_v49 }
  0xac   :  { %1400 = vmatpush1.bf16.msra.mxu0 %v2388_v30  ;;  %v2439_v30 = vld [vmem:[#allocation7 + $0x208] ss:$16 sps:$4 sm:$0xff]  }
  0xad   :  { %1401 = vmatprep.subr.bf16.mxu0 %v2396_v32  ;;  %v2447_v32 = vld [vmem:[#allocation7 + $0x22c] ss:$16 sps:$4 sm:$0xff]  }
  0xae   :  { %1486 = vmatpush1.bf16.msra.mxu1 %v2391_v51 }
  0xaf   :  { %1487 = vmatprep.subr.bf16.mxu1 %v2399_v52 }
  0xb0   :  { %1402 = vmatpush1.bf16.msra.mxu0 %v2394_v34  ;;  %v2445_v34 = vld [vmem:[#allocation7 + $0x228] ss:$16 sps:$4 sm:$0xff]  }
  0xb1   :  { %1403 = vmatprep.subr.bf16.mxu0 %v2402_v36  ;;  %v2453_v36 = vld [vmem:[#allocation7 + $0x24c] ss:$16 sps:$4 sm:$0xff]  }
  0xb2   :  { %1488 = vmatpush1.bf16.msra.mxu1 %v2397_v53 }
  0xb3   :  { %1489 = vmatprep.subr.bf16.mxu1 %v2405_v54  ;;  %v2460_v54 = vld [vmem:[#allocation7 + $0x280] ss:$16 sps:$4 sm:$0xff]  }
  0xb4   :  { %1404 = vmatpush1.bf16.msra.mxu0 %v2400_v38  ;;  %v169_v38 = vsub.s32 3, %v2805_v9 }
  0xb5   :  { %1405 = vmatprep.subr.bf16.mxu0 %v2408_v40  ;;  %v2451_v40 = vld [vmem:[#allocation7 + $0x248] ss:$16 sps:$4 sm:$0xff]  }
  0xb6   :  { %1490 = vmatpush1.bf16.msra.mxu1 %v2403_v55  ;;  %v2463_v55 = vld [vmem:[#allocation7 + $0x288] ss:$16 sps:$4 sm:$0xff]  }
  0xb7   :  { %1491 = vmatprep.subr.bf16.mxu1 %v2411_v56 }
  0xb8   :  { %1406 = vmatpush1.bf16.msra.mxu0 %v2406_v42  ;;  %v2459_v42 = vld [vmem:[#allocation7 + $0x26c] ss:$16 sps:$4 sm:$0xff]  }
  0xb9   :  { %1407 = vmatprep.subr.bf16.mxu0 %v2414_v44  ;;  %v170_v44 = vrot.slane %v153_v11, %v169_v38  ;;  %v2480_v11 = vld [vmem:[#allocation7 + $0x2e4] ss:$16 sps:$4 sm:$0xff]  }
  0xba   :  { %1492 = vmatpush1.bf16.msra.mxu1 %v2409_v57 }
  0xbb   :  { %1493 = vmatprep.subr.bf16.mxu1 %v2417_v58 }
  0xbc   :  { %1408 = vmatpush1.bf16.msra.mxu0 %v2412_v46  ;;  %v2457_v46 = vld [vmem:[#allocation7 + $0x268] ss:$16 sps:$4 sm:$0xff]  }
  0xbd   :  { %1409 = vmatprep.subr.bf16.mxu0 %v2420_v48  ;;  %v2465_v48 = vld [vmem:[#allocation7 + $0x28c] ss:$16 sps:$4 sm:$0xff]  }
  0xbe   :  { %1494 = vmatpush1.bf16.msra.mxu1 %v2415_v59  ;;  %v2468_v59 = vld [vmem:[#allocation7 + $0x2a4] ss:$16 sps:$4 sm:$0xff]  }
  0xbf   :  { %1495 = vmatprep.subr.bf16.mxu1 %v2423_v60  ;;  %v2471_v60 = vld [vmem:[#allocation7 + $0x2ac] ss:$16 sps:$4 sm:$0xff]  }
  0xc0   :  { %1410 = vmatpush1.bf16.msra.mxu0 %v2418_v50 }
  0xc1   :  { %1411 = vmatprep.subr.bf16.mxu0 %v2426_v62 }
  0xc2   :  { %1496 = vmatpush1.bf16.msra.mxu1 %v2421_v61 }
  0xc3   :  { %1497 = vmatprep.subr.bf16.mxu1 %v2429_v63 }
  0xc4   :  { %1412 = vmatpush1.bf16.msra.mxu0 %v2424_v0 }
  0xc5   :  { %1413 = vmatprep.subr.bf16.mxu0 %v2432_v2  ;;  %v2469_v2 = vld [vmem:[#allocation7 + $0x2a8] ss:$16 sps:$4 sm:$0xff]  }
  0xc6   :  { %1498 = vmatpush1.bf16.msra.mxu1 %v2427_v1  ;;  %v2466_v1 = vld [vmem:[#allocation7 + $0x2a0] ss:$16 sps:$4 sm:$0xff]  }
  0xc7   :  { %1499 = vmatprep.subr.bf16.mxu1 %v2435_v3 }
  0xc8   :  { %1414 = vmatpush1.bf16.msra.mxu0 %v2430_v4  ;;  %v2474_v4 = vld [vmem:[#allocation7 + $0x2c4] ss:$16 sps:$4 sm:$0xff]  }
  0xc9   :  { %1426 = vmatprep.subr.bf16.mxu0 %v2438_v6 }
  0xca   :  { %1500 = vmatpush1.bf16.msra.mxu1 %v2433_v5  ;;  %v2477_v5 = vld [vmem:[#allocation7 + $0x2cc] ss:$16 sps:$4 sm:$0xff]  }
  0xcb   :  { %1512 = vmatprep.subr.bf16.mxu1 %v2441_v7  ;;  %v2472_v7 = vld [vmem:[#allocation7 + $0x2c0] ss:$16 sps:$4 sm:$0xff]  }
 0x15e   :  { %v529_v15 = vpop.f32.mrb[0].mxu0 }
 0x15f   :  { %v530_v16 = vadd.f32 %v529_v15, %v158_v13  ;;  %v531_v17 = vpop.f32.mrb[1].mxu0  ;;  %v2481_v15 = vld [vmem:[#allocation7 + $0x2e8] ss:$16 sps:$4 sm:$0xff]  }
 0x160   :  { %v532_v18 = vadd.f32 %v531_v17, %v162_v14  ;;  %v533_v19 = vpop.f32.mrb[2].mxu0  ;;  %v572_v49 = vpop.f32.mrb[0].mxu1  ;;  %v2489_v17 = vld [vmem:[#allocation7 + $0x30c] ss:$16 sps:$4 sm:$0xff]  }
 0x161   :  { %v534_v20 = vadd.f32 %v533_v19, %v158_v13  ;;  %v535_v21 = vpop.f32.mrb[3].mxu0  ;;  %v581_v23 = vmax.f32 %v530_v16, 0.0  ;;  %v573_v50 = vadd.f32 %v572_v49, %v166_v43  ;;  %v574_v51 = vpop.f32.mrb[1].mxu1  ;;  %v2483_v13 = vld [vmem:[#allocation7 + $0x2ec] ss:$16 sps:$4 sm:$0xff]  }
 0x162   :  { %v536_v22 = vadd.f32 %v535_v21, %v162_v14  ;;  %v582_v25 = vmax.f32 %v532_v18, 0.0  ;;  %v575_v52 = vadd.f32 %v574_v51, %v170_v44  ;;  %v576_v53 = vpop.f32.mrb[2].mxu1  ;;  %v2478_v14 = vld [vmem:[#allocation7 + $0x2e0] ss:$16 sps:$4 sm:$0xff]   ;;  %v2486_v16 = vld [vmem:[#allocation7 + $0x304] ss:$16 sps:$4 sm:$0xff]  }
 0x163   :  { %v585_v24 = vmax.f32 %v534_v20, 0.0  ;;  %v583_v56 = vmax.f32 %v573_v50, 0.0  ;;  %v577_v57 = vadd.f32 %v576_v53, %v166_v43  ;;  %v578_v58 = vpop.f32.mrb[3].mxu1  ;;  %v2484_v18 = vld [vmem:[#allocation7 + $0x300] ss:$16 sps:$4 sm:$0xff]  }
 0x164   :  { %v586_v26 = vmax.f32 %v536_v22, 0.0  ;;  %v584_v61 = vmax.f32 %v575_v52, 0.0  ;;  %v579_v62 = vadd.f32 %v578_v58, %v170_v44  ;;  %v2487_v19 = vld [vmem:[#allocation7 + $0x308] ss:$16 sps:$4 sm:$0xff]   ;;  %v2492_v20 = vld [vmem:[#allocation7 + $0x324] ss:$16 sps:$4 sm:$0xff]  }
 0x165   :  { %v589_v27 = vpack.c.bf16 %v585_v24, %v581_v23  ;;  %v587_v63 = vmax.f32 %v577_v57, 0.0  ;;  %v2495_v21 = vld [vmem:[#allocation7 + $0x32c] ss:$16 sps:$4 sm:$0xff]   ;;  %v2490_v22 = vld [vmem:[#allocation7 + $0x320] ss:$16 sps:$4 sm:$0xff]  }
 0x166   :  { %v590_v28 = vpack.c.bf16 %v586_v26, %v582_v25  ;;  %v588_v0 = vmax.f32 %v579_v62, 0.0  ;;  %v2493_v23 = vld [vmem:[#allocation7 + $0x328] ss:$16 sps:$4 sm:$0xff]   ;;  %v2498_v24 = vld [vmem:[#allocation7 + $0x344] ss:$16 sps:$4 sm:$0xff]  }
 0x167   :  { %v2822_v3 = vpack.c.bf16 %v587_v63, %v583_v56  ;;  %v2501_v25 = vld [vmem:[#allocation7 + $0x34c] ss:$16 sps:$4 sm:$0xff]   ;;  %v2496_v26 = vld [vmem:[#allocation7 + $0x340] ss:$16 sps:$4 sm:$0xff]   ;;  %v2529_v49 = vld [vmem:[#allocation7 + $0x3e8] ss:$16 sps:$4 sm:$0xff]  }
 0x168   :  { %1415 = vmatprep.mubr.bf16.mxu0 %v590_v28  ;;  %1501 = vmatprep.mubr.bf16.mxu1 %v590_v28  ;;  %v592_v6 = vpack.c.bf16 %v588_v0, %v584_v61  ;;  %v2504_v28 = vld [vmem:[#allocation7 + $0x364] ss:$16 sps:$4 sm:$0xff]   ;;  %v2525_v43 = vld [vmem:[#allocation7 + $0x3cc] ss:$16 sps:$4 sm:$0xff]   ;;  %v2520_v44 = vld [vmem:[#allocation7 + $0x3c0] ss:$16 sps:$4 sm:$0xff]  }
 0x169   :  { %1416 = vmatmul.mubr.bf16.vlgmr.msra.gmra.mrb[4].mxu0 %v589_v27  ;;  %1502 = vmatmul.mubr.bf16.vlgmr.msra.gmra.mrb[4].mxu1 %v589_v27  ;;  %v2499_v27 = vld [vmem:[#allocation7 + $0x348] ss:$16 sps:$4 sm:$0xff]   ;;  %v2532_v50 = vld [vmem:[#allocation8 + $0x40] sm:$0xff]   ;;  %v2540_v58 = vld [vmem:[#allocation8 + $0x50] sm:$0xff]  }
 0x16a   :  { %1427 = vmatpush1.bf16.msra.mxu0 %v2436_v29  ;;  %1513 = vmatpush1.bf16.msra.mxu1 %v2439_v30  ;;  %v2507_v29 = vld [vmem:[#allocation7 + $0x36c] ss:$16 sps:$4 sm:$0xff]   ;;  %v2502_v30 = vld [vmem:[#allocation7 + $0x360] ss:$16 sps:$4 sm:$0xff]  }
 0x16b   :  { %1428 = vmatprep.subr.bf16.mxu0 %v2444_v31  ;;  %1514 = vmatprep.subr.bf16.mxu1 %v2447_v32  ;;  %v2505_v31 = vld [vmem:[#allocation7 + $0x368] ss:$16 sps:$4 sm:$0xff]   ;;  %v2510_v32 = vld [vmem:[#allocation7 + $0x384] ss:$16 sps:$4 sm:$0xff]  }
 0x16c   :  { %1458 = vmatprep.mubr.bf16.mxu0 %v592_v6  ;;  %1544 = vmatprep.mubr.bf16.mxu1 %v592_v6  ;;  %v2533_v51 = vld [vmem:[#allocation8 + $0xc0] sm:$0xff]   ;;  %v2538_v56 = vld [vmem:[#allocation8 + $0x8] sm:$0xff]   ;;  %v2543_v61 = vld [vmem:[#allocation8 + $0x90] sm:$0xff]  }
 0x16d   :  { %v2534_v52 = vld [vmem:[#allocation8] sm:$0xff]   ;;  %v2539_v57 = vld [vmem:[#allocation8 + $0x88] sm:$0xff]   ;;  %v2544_v62 = vld [vmem:[#allocation8 + $0x58] sm:$0xff]  }
 0x16e   :  { %1429 = vmatpush1.bf16.msra.mxu0 %v2442_v33  ;;  %1515 = vmatpush1.bf16.msra.mxu1 %v2445_v34  ;;  %v2513_v33 = vld [vmem:[#allocation7 + $0x38c] ss:$16 sps:$4 sm:$0xff]   ;;  %v2508_v34 = vld [vmem:[#allocation7 + $0x380] ss:$16 sps:$4 sm:$0xff]  }
 0x16f   :  { %1430 = vmatprep.subr.bf16.mxu0 %v2450_v35  ;;  %1516 = vmatprep.subr.bf16.mxu1 %v2453_v36  ;;  %v2511_v35 = vld [vmem:[#allocation7 + $0x388] ss:$16 sps:$4 sm:$0xff]   ;;  %v2516_v36 = vld [vmem:[#allocation7 + $0x3a4] ss:$16 sps:$4 sm:$0xff]  }
 0x170   :  { %v2535_v53 = vld [vmem:[#allocation8 + $0x80] sm:$0xff]   ;;  %v2545_v63 = vld [vmem:[#allocation8 + $0xd8] sm:$0xff]   ;;  %v2552_v6 = vld [vmem:[#allocation8 + $0x68] sm:$0xff]  }
 0x171   :  { %v2546_v0 = vld [vmem:[#allocation8 + $0x18] sm:$0xff]  }
 0x172   :  { %1431 = vmatpush1.bf16.msra.mxu0 %v2448_v39  ;;  %1517 = vmatpush1.bf16.msra.mxu1 %v2451_v40  ;;  %v2519_v39 = vld [vmem:[#allocation7 + $0x3ac] ss:$16 sps:$4 sm:$0xff]   ;;  %v2514_v40 = vld [vmem:[#allocation7 + $0x3a0] ss:$16 sps:$4 sm:$0xff]  }
 0x173   :  { %1432 = vmatprep.subr.bf16.mxu0 %v2456_v41  ;;  %1518 = vmatprep.subr.bf16.mxu1 %v2459_v42  ;;  %v2517_v41 = vld [vmem:[#allocation7 + $0x3a8] ss:$16 sps:$4 sm:$0xff]   ;;  %v2522_v42 = vld [vmem:[#allocation7 + $0x3c4] ss:$16 sps:$4 sm:$0xff]  }
 0x176   :  { %1433 = vmatpush1.bf16.msra.mxu0 %v2454_v45  ;;  %1519 = vmatpush1.bf16.msra.mxu1 %v2457_v46  ;;  %v2523_v45 = vld [vmem:[#allocation7 + $0x3c8] ss:$16 sps:$4 sm:$0xff]   ;;  %v2528_v46 = vld [vmem:[#allocation7 + $0x3e4] ss:$16 sps:$4 sm:$0xff]  }
 0x177   :  { %1434 = vmatprep.subr.bf16.mxu0 %v2462_v47  ;;  %1520 = vmatprep.subr.bf16.mxu1 %v2465_v48  ;;  %v2531_v47 = vld [vmem:[#allocation7 + $0x3ec] ss:$16 sps:$4 sm:$0xff]   ;;  %v2526_v48 = vld [vmem:[#allocation7 + $0x3e0] ss:$16 sps:$4 sm:$0xff]  }
 0x17a   :  { %1435 = vmatpush1.bf16.msra.mxu0 %v2460_v54  ;;  %1521 = vmatpush1.bf16.msra.mxu1 %v2463_v55  ;;  %v2536_v54 = vld [vmem:[#allocation8 + $0x48] sm:$0xff]  }
 0x17b   :  { %1436 = vmatprep.subr.bf16.mxu0 %v2468_v59  ;;  %1522 = vmatprep.subr.bf16.mxu1 %v2471_v60  ;;  %v2537_v55 = vld [vmem:[#allocation8 + $0xc8] sm:$0xff]   ;;  %v2541_v59 = vld [vmem:[#allocation8 + $0xd0] sm:$0xff]  }
 0x17c   :  { %v2542_v60 = vld [vmem:[#allocation8 + $0x10] sm:$0xff]  }
 0x17e   :  { %1437 = vmatpush1.bf16.msra.mxu0 %v2466_v1  ;;  %1523 = vmatpush1.bf16.msra.mxu1 %v2469_v2  ;;  %v2547_v1 = vld [vmem:[#allocation8 + $0x98] sm:$0xff]   ;;  %v2548_v2 = vld [vmem:[#allocation8 + $0x60] sm:$0xff]  }
 0x17f   :  { %1438 = vmatprep.subr.bf16.mxu0 %v2474_v4  ;;  %1524 = vmatprep.subr.bf16.mxu1 %v2477_v5  ;;  %v2550_v4 = vld [vmem:[#allocation8 + $0x20] sm:$0xff]  }
 0x180   :  { %v2551_v5 = vld [vmem:[#allocation8 + $0xa0] sm:$0xff]  }
 0x182   :  { %1439 = vmatpush1.bf16.msra.mxu0 %v2472_v7  ;;  %1525 = vmatpush1.bf16.msra.mxu1 %v2475_v8  ;;  %v2553_v7 = vld [vmem:[#allocation8 + $0xe8] sm:$0xff]  }
 0x183   :  { %1440 = vmatprep.subr.bf16.mxu0 %v2480_v11  ;;  %1526 = vmatprep.subr.bf16.mxu1 %v2483_v13  ;;  %v2554_v8 = vld [vmem:[#allocation8 + $0x28] sm:$0xff]   ;;  %v2556_v13 = vld [vmem:[#allocation8 + $0x70] sm:$0xff]  }
 0x184   :  { %v2555_v11 = vld [vmem:[#allocation8 + $0xa8] sm:$0xff]  }
 0x186   :  { %1441 = vmatpush1.bf16.msra.mxu0 %v2478_v14  ;;  %1527 = vmatpush1.bf16.msra.mxu1 %v2481_v15  ;;  %v2557_v14 = vld [vmem:[#allocation8 + $0xf0] sm:$0xff]  }
 0x187   :  { %1442 = vmatprep.subr.bf16.mxu0 %v2486_v16  ;;  %1528 = vmatprep.subr.bf16.mxu1 %v2489_v17  ;;  %v2558_v15 = vld [vmem:[#allocation8 + $0x30] sm:$0xff]   ;;  %v2560_v17 = vld [vmem:[#allocation8 + $0x78] sm:$0xff]  }
 0x188   :  { %v2559_v16 = vld [vmem:[#allocation8 + $0xb0] sm:$0xff]  }
 0x18a   :  { %1443 = vmatpush1.bf16.msra.mxu0 %v2484_v18  ;;  %1529 = vmatpush1.bf16.msra.mxu1 %v2487_v19  ;;  %v2561_v18 = vld [vmem:[#allocation8 + $0xf8] sm:$0xff]  }
 0x18b   :  { %1444 = vmatprep.subr.bf16.mxu0 %v2492_v20  ;;  %1530 = vmatprep.subr.bf16.mxu1 %v2495_v21  ;;  %v2562_v19 = vld [vmem:[#allocation8 + $0x38] sm:$0xff]   ;;  %v721_v21 = vld [vmem:[%s2859_s4] sm:$0xf] }
 0x18c   :  { %v2563_v20 = vld [vmem:[#allocation8 + $0xb8] sm:$0xff]  }
 0x18e   :  { %1445 = vmatpush1.bf16.msra.mxu0 %v2490_v22  ;;  %1531 = vmatpush1.bf16.msra.mxu1 %v2493_v23  ;;  %v726_v22 = vrot.slane %v721_v21, %v157_v10  ;;  %v734_v23 = vrot.slane %v721_v21, %v165_v37 }
 0x18f   :  { %1446 = vmatprep.subr.bf16.mxu0 %v2498_v24  ;;  %1532 = vmatprep.subr.bf16.mxu1 %v2501_v25  ;;  %v730_v24 = vrot.slane %v721_v21, %v161_v12  ;;  %v738_v25 = vrot.slane %v721_v21, %v169_v38 }
 0x192   :  { %1447 = vmatpush1.bf16.msra.mxu0 %v2496_v26  ;;  %1533 = vmatpush1.bf16.msra.mxu1 %v2499_v27 }
 0x193   :  { %1448 = vmatprep.subr.bf16.mxu0 %v2504_v28  ;;  %1534 = vmatprep.subr.bf16.mxu1 %v2507_v29 }
 0x196   :  { %1449 = vmatpush1.bf16.msra.mxu0 %v2502_v30  ;;  %1535 = vmatpush1.bf16.msra.mxu1 %v2505_v31 }
 0x197   :  { %1450 = vmatprep.subr.bf16.mxu0 %v2510_v32  ;;  %1536 = vmatprep.subr.bf16.mxu1 %v2513_v33 }
 0x19a   :  { %1451 = vmatpush1.bf16.msra.mxu0 %v2508_v34  ;;  %1537 = vmatpush1.bf16.msra.mxu1 %v2511_v35 }
 0x19b   :  { %1452 = vmatprep.subr.bf16.mxu0 %v2516_v36  ;;  %1538 = vmatprep.subr.bf16.mxu1 %v2519_v39 }
 0x19e   :  { %1453 = vmatpush1.bf16.msra.mxu0 %v2514_v40  ;;  %1539 = vmatpush1.bf16.msra.mxu1 %v2517_v41 }
 0x19f   :  { %1454 = vmatprep.subr.bf16.mxu0 %v2522_v42  ;;  %1540 = vmatprep.subr.bf16.mxu1 %v2525_v43 }
 0x1a2   :  { %1455 = vmatpush1.bf16.msra.mxu0 %v2520_v44  ;;  %1541 = vmatpush1.bf16.msra.mxu1 %v2523_v45 }
 0x1a3   :  { %1456 = vmatprep.subr.bf16.mxu0 %v2528_v46  ;;  %1542 = vmatprep.subr.bf16.mxu1 %v2531_v47 }
 0x1a6   :  { %1457 = vmatpush1.bf16.msra.mxu0 %v2526_v48  ;;  %1543 = vmatpush1.bf16.msra.mxu1 %v2529_v49 }
 0x1a7   :  { %2175 = vmatprep.subr.bf16.mxu0 %v2532_v50  ;;  %2197 = vmatprep.subr.bf16.mxu1 %v2533_v51 }
 0x1a9   :  { %1459 = vmatmul.mubr.bf16.vlgmr.msra.gmra.mrb[4].mxu0 %v2822_v3  ;;  %1545 = vmatmul.mubr.bf16.vlgmr.msra.gmra.mrb[4].mxu1 %v2822_v3  ;;  %v2549_v3 = vld [vmem:[#allocation8 + $0xe0] sm:$0xff]  }
 0x1aa   :  { %2176 = vmatpush3.bf16.msra.mxu0 %v2534_v52  ;;  %2198 = vmatpush3.bf16.msra.mxu1 %v2535_v53  ;;  %v2133_v53 = vld [vmem:[%s2861_s6] ss:$0 sm:$0xff]  ;;  %s2652_s6 = scalar_lea.vmem %s1928_s8, 128 }
 0x1ab   :  { %2177 = vmatprep.subr.bf16.mxu0 %v2536_v54  ;;  %2199 = vmatprep.subr.bf16.mxu1 %v2537_v55  ;;  %p2653_p4 = scmp.ne.s32.totalorder %s1928_s8, %s2652_s6  ;;  %p2658_p6 = scmp.lt.s32.totalorder %s2652_s6, %s2652_s6 }
 0x1ad   :  { %p2659_p7 = por %p2658_p6, %p2657_p5 }
 0x1ae   :  { %2178 = vmatpush3.bf16.msra.mxu0 %v2538_v56  ;;  %2200 = vmatpush3.bf16.msra.mxu1 %v2539_v57 }
 0x1af   :  { %2179 = vmatprep.subr.bf16.mxu0 %v2540_v58  ;;  %2201 = vmatprep.subr.bf16.mxu1 %v2541_v59  ;;  %p2660_p8 = pnand %p2659_p7, %p2653_p4 }
 0x1b2   :  { %2180 = vmatpush3.bf16.msra.mxu0 %v2542_v60  ;;  %2202 = vmatpush3.bf16.msra.mxu1 %v2543_v61 }
 0x1b3   :  { %2181 = vmatprep.subr.bf16.mxu0 %v2544_v62  ;;  %2203 = vmatprep.subr.bf16.mxu1 %v2545_v63 }
 0x1b6   :  { %2182 = vmatpush3.bf16.msra.mxu0 %v2546_v0  ;;  %2204 = vmatpush3.bf16.msra.mxu1 %v2547_v1 }
 0x1b7   :  { %2183 = vmatprep.subr.bf16.mxu0 %v2548_v2  ;;  %2205 = vmatprep.subr.bf16.mxu1 %v2549_v3 }
 0x1ba   :  { %2184 = vmatpush3.bf16.msra.mxu0 %v2550_v4  ;;  %2206 = vmatpush3.bf16.msra.mxu1 %v2551_v5 }
 0x1bb   :  { %2185 = vmatprep.subr.bf16.mxu0 %v2552_v6  ;;  %2207 = vmatprep.subr.bf16.mxu1 %v2553_v7 }
 0x1be   :  { %2186 = vmatpush3.bf16.msra.mxu0 %v2554_v8  ;;  %2208 = vmatpush3.bf16.msra.mxu1 %v2555_v11 }
 0x1bf   :  { %2187 = vmatprep.subr.bf16.mxu0 %v2556_v13  ;;  %2209 = vmatprep.subr.bf16.mxu1 %v2557_v14 }
 0x1c2   :  { %2188 = vmatpush3.bf16.msra.mxu0 %v2558_v15  ;;  %2210 = vmatpush3.bf16.msra.mxu1 %v2559_v16 }
 0x1c3   :  { %2189 = vmatprep.subr.bf16.mxu0 %v2560_v17  ;;  %2211 = vmatprep.subr.bf16.mxu1 %v2561_v18 }
 0x1c6   :  { %2190 = vmatpush3.bf16.msra.mxu0 %v2562_v19  ;;  %2212 = vmatpush3.bf16.msra.mxu1 %v2563_v20 }
 0x27c   :  { %v1460_v26 = vpop.f32.mrb[4].mxu0  ;;  %v1546_v27 = vpop.f32.mrb[4].mxu1 }
 0x27d   :  { %v2219_v28 = vadd.f32 %v1460_v26, %v726_v22  ;;  %v2223_v29 = vadd.f32 %v1546_v27, %v734_v23  ;;  %v1462_v30 = vpop.f32.mrb[5].mxu0  ;;  %v1548_v31 = vpop.f32.mrb[5].mxu1 }
 0x27e   :  { %v2220_v32 = vadd.f32 %v1462_v30, %v730_v24  ;;  %v2224_v33 = vadd.f32 %v1548_v31, %v738_v25  ;;  %v1464_v34 = vpop.f32.mrb[6].mxu0  ;;  %v1550_v35 = vpop.f32.mrb[6].mxu1 }
 0x27f   :  { %v2221_v10 = vadd.f32 %v1464_v34, %v726_v22  ;;  %v2225_v36 = vadd.f32 %v1550_v35, %v734_v23  ;;  %v1466_v39 = vpop.f32.mrb[7].mxu0  ;;  %v1552_v37 = vpop.f32.mrb[7].mxu1  ;;  %v1555_v12 = vmax.f32 %v2219_v28, 0.0  ;;  %v1557_v42 = vmax.f32 %v2223_v29, 0.0 }
 0x280   :  { %v2222_v40 = vadd.f32 %v1466_v39, %v730_v24  ;;  %v2226_v41 = vadd.f32 %v1552_v37, %v738_v25  ;;  %v1556_v43 = vmax.f32 %v2220_v32, 0.0  ;;  %v1558_v44 = vmax.f32 %v2224_v33, 0.0 }
 0x281   :  { %v1559_v9 = vmax.f32 %v2221_v10, 0.0  ;;  %v1561_v38 = vmax.f32 %v2225_v36, 0.0 }
 0x282   :  { %v1560_v45 = vmax.f32 %v2222_v40, 0.0  ;;  %v1562_v46 = vmax.f32 %v2226_v41, 0.0 }
 0x283   :  { %v1563_v47 = vpack.c.bf16 %v1559_v9, %v1555_v12  ;;  %v1565_v48 = vpack.c.bf16 %v1561_v38, %v1557_v42 }
 0x284   :  { %v1564_v49 = vpack.c.bf16 %v1560_v45, %v1556_v43  ;;  %v1566_v50 = vpack.c.bf16 %v1562_v46, %v1558_v44 }
 0x286   :  { %1862 = vmatprep.mubr.bf16.mxu0 %v1564_v49  ;;  %1903 = vmatprep.mubr.bf16.mxu1 %v1566_v50 }
 0x287   :  { %1863 = vmatmul.mubr.bf16.vlgmr.msra.gmra.mrb[8].mxu0 %v1563_v47  ;;  %1904 = vmatmul.mubr.bf16.vlgmr.msra.gmra.mrb[8].mxu1 %v1565_v48 }
 0x35a   :  { %v2191_v51 = vpop.f32.mrb[8].mxu0  ;;  %v2213_v52 = vpop.f32.mrb[8].mxu1 }
 0x35b   :  { %v2192_v54 = vpop.f32.mrb[9].mxu0  ;;  %v2214_v55 = vpop.f32.mrb[9].mxu1 }
 0x35c   :  { %v2193_v56 = vadd.f32 %v2192_v54, %v2191_v51  ;;  %v2215_v57 = vadd.f32 %v2214_v55, %v2213_v52  ;;  %v2194_v58 = vpop.f32.mrb[10].mxu0  ;;  %v2216_v59 = vpop.f32.mrb[10].mxu1 }
 0x35d   :  { %v2195_v60 = vpop.f32.mrb[11].mxu0  ;;  %v2217_v61 = vpop.f32.mrb[11].mxu1 }
 0x35e   :  { %v1865_v62 = vadd.f32 %v2193_v56, %v2133_v53  ;;  %v2196_v63 = vadd.f32 %v2195_v60, %v2194_v58  ;;  %v2218_v0 = vadd.f32 %v2217_v61, %v2216_v59 }
 0x360   :  { %v1906_v1 = vadd.f32 %v2215_v57, %v1865_v62  ;;  %v1868_v2 = vadd.f32 %v2196_v63, %v2133_v53 }
 0x362   :  { %v1909_v3 = vadd.f32 %v2218_v0, %v1868_v2 }
 0x364   :  { %v2173_v4 = vpack.c.bf16 %v1909_v3, %v1906_v1 }
 0x366   :  { %2174 = vst [vmem:[#allocation10] sm:$0xff] %v2173_v4  }
 0x367   :  { %2663 = shalt.err (!%p2660_p8)
}
 0x368   :  { %s2664_s11 = scalar_lea.hbm %s2862_s7, 128 }
 0x369   :  { %p2665_p9 = scmp.ne.s32.totalorder %s2862_s7, %s2664_s11  ;;  %p2668_p10 = scmp.lt.u32.totalorder %s2664_s11, %s2862_s7 }
 0x36b   :  { %p2670_p11 = pnand %p2668_p10, %p2665_p9 }
 0x36d   :  { %2673 = shalt.err (!%p2670_p11)
}
 0x36e   :  { %1933 = dma.vmem_to_hbm [thread:$0]  %s1928_s8, 128, %s2862_s7, [#allocation4], %s2688_s3, %s2688_s3, %s2689_s13  }
 0x36f   :  { %2680 = dma.done.wait [#allocation4], 128  }
 0x370   :  { %2681 = vsyncadd [#allocation4], 4294967168 }
 0x371   :  { %1937 = vsyncpa [#allocation3], 1 }
 0x372   :  { %1938 = vsyncpa [#allocation6], 1 }
 0x373   :  { %1939 = vsyncpa [#allocation9], 1 }
 0x374   :  { %1940 = vsyncpa [#allocation4], 1 }

</bundles_post_ra>
